<compile_context>
chip_gen: v6e
topology: v6e:2x2x1
jax: 0.10.0
libtpu: 0.0.40
codegen_flags: <defaults>
</compile_context>

<pallas_src>
import jax
import jax.numpy as jnp
from jax.experimental import pallas as pl
from jax.experimental.pallas import tpu as pltpu

EPS = 1e-6
_MIB = 1024 * 1024


def _decoder_norm_kernel(alpha_ref, bias_ref, x_ref, o_ref):
    # x_ref block: (ts, D) in VMEM; alpha/bias: (1, 1) scalars in SMEM.
    #
    # Row-independence invariant: every op below reduces only along the last
    # axis.  The last grid block may contain out-of-bounds rows whose input
    # contents are unspecified (possibly NaN/Inf); their outputs are masked
    # off by Pallas on store.  Do NOT add cross-row reductions here without
    # reintroducing explicit padding in the wrapper.
    x = x_ref[...].astype(jnp.float32)
    d = x.shape[-1]
    mean = jnp.mean(x, axis=-1, keepdims=True)
    diff = x - mean
    # torch.std uses the unbiased estimator (ddof = 1).
    var = jnp.sum(diff * diff, axis=-1, keepdims=True) / float(d - 1)
    std = jnp.sqrt(var)
    # Per-row fused scale: one divide per row instead of one per element.
    # Exact divide (not pl.reciprocal(approx=True)) for bit-close parity with
    # the torch reference; the kernel is HBM-bound so this is free.
    inv = alpha_ref[0, 0] / (std + EPS)
    o_ref[...] = (diff * inv + bias_ref[0, 0]).astype(o_ref.dtype)


def _physical_vmem_bytes():
    """Best-effort per-core VMEM query; conservative (v7x = 64 MiB) fallback."""
    try:
        info = pltpu.get_tpu_info()
        v = int(getattr(info, "vmem_capacity_bytes", 0))
        if v > 0:
            return v
    except Exception:
        pass
    return 64 * _MIB


def _budgets(phys_vmem):
    """(target_block_bytes, base_vmem_limit_bytes) per TPU generation."""
    if phys_vmem >= 100 * _MIB:
        # v5e / v6e: 128 MiB physical VMEM.  Bigger blocks amortize the
        # ~0.35 us per-grid-step overhead; live footprint ~= 4x block
        # (double-buffered in + out) stays well under the 64 MiB limit.
        return 8 * _MIB, 64 * _MIB
    # v7x (or unknown): only 64 MiB physical per TC -> smaller, VMEM-safe blocks.
    return 4 * _MIB, 48 * _MIB


def _sublane(itemsize):
    # Rows packed per vreg sublane: 8 (f32) / 16 (bf16) / 32 (int8/fp8).
    return max(8, 32 // max(1, itemsize))


def _pick_row_tile(n_rows, d, itemsize, target_block_bytes, min_grid_steps=4):
    """Rows per tile: sublane-aligned, block bytes <= target, and capped so the
    grid keeps >= min_grid_steps steps (both v7x TensorCores get work) whenever
    n_rows is large enough."""
    sub = _sublane(itemsize)
    row_bytes = max(1, d * itemsize)
    max_rows = max(sub, (target_block_bytes // row_bytes) // sub * sub)
    rows_padded = pl.cdiv(n_rows, sub) * sub
    ts = int(min(rows_padded, max_rows))
    if n_rows >= min_grid_steps * sub:
        cap = max(sub, (n_rows // min_grid_steps) // sub * sub)
        ts = min(ts, cap)
    return ts


def layer_norm_pallas(x, alpha, bias, *, donate_x=False):
    """x: (..., D). alpha, bias: scalar params (shape (1,)).

    donate_x=True aliases x's flattened buffer with the output (no second
    full-size HBM allocation).  Only enable when x is not used afterwards.
    """
    orig_shape = x.shape
    d = orig_shape[-1]
    x2 = x.reshape(-1, d)
    n = x2.shape[0]
    itemsize = jnp.dtype(x2.dtype).itemsize

    phys_vmem = _physical_vmem_bytes()
    target_block_bytes, vmem_limit = _budgets(phys_vmem)
    ts = _pick_row_tile(n, d, itemsize, target_block_bytes)

    # No wrapper-side padding / slicing: Pallas masks the partial last block.
    grid = (pl.cdiv(n, ts),)

    # Very-large-D guard: make sure the scoped limit covers the
    # double-buffered in + out blocks even when a minimum-height block is big.
    block_bytes = ts * d * itemsize
    vmem_limit = int(min(phys_vmem - 8 * _MIB,
                         max(vmem_limit, 4 * block_bytes + 2 * _MIB)))
    # TODO(synk): if 4 * block_bytes still exceeds physical VMEM (enormous
    # d_model), fall back to a column-chunked two-pass reduction.

    alpha2d = jnp.asarray(alpha, jnp.float32).reshape(1, 1)
    bias2d = jnp.asarray(bias, jnp.float32).reshape(1, 1)

    out = pl.pallas_call(
        _decoder_norm_kernel,
        out_shape=jax.ShapeDtypeStruct((n, d), x.dtype),
        grid_spec=pltpu.PrefetchScalarGridSpec(
            num_scalar_prefetch=0,
            grid=grid,
            in_specs=[
                pl.BlockSpec(memory_space=pltpu.SMEM),  # alpha
                pl.BlockSpec(memory_space=pltpu.SMEM),  # bias
                pl.BlockSpec((ts, d), lambda i: (i, 0)),
            ],
            out_specs=pl.BlockSpec((ts, d), lambda i: (i, 0)),
        ),
        compiler_params=pltpu.CompilerParams(
            dimension_semantics=("parallel",),
            vmem_limit_bytes=vmem_limit,
        ),
        input_output_aliases=({2: 0} if donate_x else {}),
    )(alpha2d, bias2d, x2)

    return out.reshape(orig_shape)


def decoder_forward(x, encoder_output, src_mask, tgt_mask, alpha, bias):
    """Equivalent of Decoder.forward with an empty layer list:
       x passes through zero decoder layers, then LayerNormalization."""
    # (layers loop is identity -- see TODO(synk) above)
    del encoder_output, src_mask, tgt_mask
    return layer_norm_pallas(x, alpha, bias)


if __name__ == "__main__":
    key = jax.random.PRNGKey(0)
    kx, ke = jax.random.split(key)

    B, S_TGT, S_SRC, D = 2, 8, 8, 32
    x = jax.random.normal(kx, (B, S_TGT, D), dtype=jnp.float32)
    encoder_output = jax.random.normal(ke, (B, S_SRC, D), dtype=jnp.float32)
    src_mask = jnp.ones((B, 1, S_TGT, S_SRC), dtype=jnp.float32)
    tgt_mask = jnp.tril(jnp.ones((S_TGT, S_TGT), dtype=jnp.float32))[None, None]

    # Deterministic parameter init (matches nn.Parameter(torch.ones(1)/zeros(1))).
    alpha = jnp.ones((1,), dtype=jnp.float32)
    bias = jnp.zeros((1,), dtype=jnp.float32)

    out = decoder_forward(x, encoder_output, src_mask, tgt_mask, alpha, bias)
    out = jax.block_until_ready(out)

    # Sanity check against a plain-JAX reference of the same math.
    mean = jnp.mean(x, axis=-1, keepdims=True)
    std = jnp.sqrt(jnp.sum((x - mean) ** 2, axis=-1, keepdims=True) / (D - 1))
    ref = alpha[0] * (x - mean) / (std + EPS) + bias[0]
    assert out.shape == x.shape
    assert jnp.allclose(out, ref, atol=1e-5, rtol=1e-5)

    print("KERNEL_OK")
</pallas_src>

<mosaic_0001>
module attributes {stable_mosaic.version = 11 : i64} {
  func.func @_decoder_norm_kernel(%arg0: i32, %arg1: memref<1x1xf32, #tpu.memory_space<smem>>, %arg2: memref<1x1xf32, #tpu.memory_space<smem>>, %arg3: memref<16x32xf32, #tpu.memory_space<vmem>>, %arg4: memref<16x32xf32, #tpu.memory_space<vmem>>) attributes {dimension_semantics = [#tpu.dimension_semantics<parallel>], iteration_bounds = array<i64: 1>, scalar_prefetch = 0 : i64, scratch_operands = 0 : i64, tpu.core_type = #tpu.core_type<tc>, window_params = [{transform_indices = @transform_0, window_bounds = array<i64: 1, 1>}, {transform_indices = @transform_1, window_bounds = array<i64: 1, 1>}, {transform_indices = @transform_2, window_bounds = array<i64: 16, 32>}, {transform_indices = @transform_3, window_bounds = array<i64: 16, 32>}]} {
    %c0 = arith.constant 0 : index
    %c0_0 = arith.constant 0 : index
    %0 = vector.load %arg3[%c0, %c0_0] : memref<16x32xf32, #tpu.memory_space<vmem>>, vector<16x32xf32>
    %cst = arith.constant dense<0.000000e+00> : vector<16xf32>
    %1 = vector.multi_reduction <add>, %0, %cst [1] : vector<16x32xf32> to vector<16xf32>
    %2 = vector.shape_cast %1 : vector<16xf32> to vector<16x1xf32>
    %cst_1 = arith.constant 3.200000e+01 : f32
    %3 = vector.broadcast %cst_1 : f32 to vector<16x1xf32>
    %4 = arith.divf %2, %3 : vector<16x1xf32>
    %5 = vector.broadcast %4 : vector<16x1xf32> to vector<16x32xf32>
    %6 = arith.subf %0, %5 : vector<16x32xf32>
    %7 = arith.mulf %6, %6 : vector<16x32xf32>
    %cst_2 = arith.constant dense<0.000000e+00> : vector<16xf32>
    %8 = vector.multi_reduction <add>, %7, %cst_2 [1] : vector<16x32xf32> to vector<16xf32>
    %9 = vector.shape_cast %8 : vector<16xf32> to vector<16x1xf32>
    %cst_3 = arith.constant 3.100000e+01 : f32
    %10 = vector.broadcast %cst_3 : f32 to vector<16x1xf32>
    %11 = arith.divf %9, %10 : vector<16x1xf32>
    %12 = math.sqrt %11 : vector<16x1xf32>
    %c0_4 = arith.constant 0 : index
    %c0_5 = arith.constant 0 : index
    %13 = memref.load %arg1[%c0_4, %c0_5] : memref<1x1xf32, #tpu.memory_space<smem>>
    %cst_6 = arith.constant 9.99999997E-7 : f32
    %14 = vector.broadcast %cst_6 : f32 to vector<16x1xf32>
    %15 = arith.addf %12, %14 : vector<16x1xf32>
    %16 = vector.broadcast %13 : f32 to vector<16x1xf32>
    %17 = arith.divf %16, %15 : vector<16x1xf32>
    %18 = vector.broadcast %17 : vector<16x1xf32> to vector<16x32xf32>
    %19 = arith.mulf %6, %18 : vector<16x32xf32>
    %c0_7 = arith.constant 0 : index
    %c0_8 = arith.constant 0 : index
    %20 = memref.load %arg2[%c0_7, %c0_8] : memref<1x1xf32, #tpu.memory_space<smem>>
    %21 = vector.broadcast %20 : f32 to vector<16x32xf32>
    %22 = arith.addf %19, %21 : vector<16x32xf32>
    %c0_9 = arith.constant 0 : index
    %c0_10 = arith.constant 0 : index
    %23 = vector.load %arg4[%c0_9, %c0_10] : memref<16x32xf32, #tpu.memory_space<vmem>>, vector<16x32xf32>
    tpu.vector_store %arg4[%c0_9, %c0_10], %22 {strides = array<i32>} : memref<16x32xf32, #tpu.memory_space<vmem>>, vector<16x32xf32>,
    return
  }
  func.func @transform_0(%arg0: i32) -> (i32, i32) {
    %c0_i32 = arith.constant 0 : i32
    %c0_i32_0 = arith.constant 0 : i32
    %c0_i32_1 = arith.constant 0 : i32
    return %c0_i32, %c0_i32_0 : i32, i32
  }
  func.func @transform_1(%arg0: i32) -> (i32, i32) {
    %c0_i32 = arith.constant 0 : i32
    %c0_i32_0 = arith.constant 0 : i32
    %c0_i32_1 = arith.constant 0 : i32
    return %c0_i32, %c0_i32_0 : i32, i32
  }
  func.func @transform_2(%arg0: i32) -> (i32, i32) {
    %c0_i32 = arith.constant 0 : i32
    %c0_i32_0 = arith.constant 0 : i32
    return %arg0, %c0_i32 : i32, i32
  }
  func.func @transform_3(%arg0: i32) -> (i32, i32) {
    %c0_i32 = arith.constant 0 : i32
    %c0_i32_0 = arith.constant 0 : i32
    return %arg0, %c0_i32 : i32, i32
  }
}

</mosaic_0001>

<bundles_post_ra>
// kernel: tpu_custom_call.1
= control target key start
LH: loop header
LB: loop body
LE: loop exit
PB: predicated region body
PF: predicated region fallthrough
CT: control target
= control target key end

     0   :  { %10 = vsyncpa [#allocation5], 0  ;;  %s207_s0 = inlined_call_operand.<no memory space> [shape: f32[1,1], index: 0, kind: input, shape index: {}]   ;;  %s208_s1 = inlined_call_operand.<no memory space> [shape: f32[1,1], index: 1, kind: input, shape index: {}]   ;;  %s209_s2 = inlined_call_operand.hbm [shape: f32[16,32], index: 2, kind: input, shape index: {}]   ;;  %s210_s3 = inlined_call_operand.hbm [shape: f32[16,32], index: 3, kind: output, shape index: {}]  }
   0x1   :  { %11 = vsyncpa [#allocation6], 0  ;;  %s159_s12 = smov [#allocation4]  }
   0x2   :  { %s21_s13 = sshll.u32 %s159_s12, 4  ;;  %s22_s13 = int_to_ptr.vmem [resolvable:$true] %s21_s13 }
   0x3   :  { %s123_s14 = scalar_lea.vmem %s22_s13, 256  ;;  %p128_p1 = scmp.lt.s32.totalorder %s22_s13, %s22_s13 }
   0x4   :  { %p124_p0 = scmp.ne.s32.totalorder %s22_s13, %s123_s14  ;;  %p129_p2 = scmp.lt.s32.totalorder %s123_s14, %s123_s14 }
   0x6   :  { %p130_p3 = por %p129_p2, %p128_p1 }
   0x8   :  { %p131_p4 = pnand %p130_p3, %p124_p0 }
   0xa   :  { %134 = shalt.err (!%p131_p4)
}
   0xb   :  { %s160_s15 = smov 128   ;;  %s161_s16 = smov 8  }
   0xc   :  { %27 = dma.hbm_to_vmem [thread:$0]  %s209_s2, 256, %s22_s13, [#allocation5], %s160_s15, %s160_s15, %s161_s16  }
   0xd   :  { %155 = dma.done.wait [#allocation5], 256  }
   0xe   :  { %156 = vsyncadd [#allocation5], 4294967040  ;;  %vm33_vm0 = vcmask 261120   ;;  %v31_v0 = vld [vmem:[#allocation4] sm:$0xff]  ;;  %v32_v1 = vld [vmem:[#allocation4 + $0x8] sm:$0xff]  ;;  %v73_v30 = vstv %s207_s0  ;;  %v81_v33 = vstv %s208_s1  ;;  %s162_s22 = smov [#allocation7]  }
   0xf   :  { %v34_v2 = vsel %vm33_vm0, %v31_v0, 0.0  ;;  %v37_v3 = vsel %vm33_vm0, %v32_v1, 0.0  ;;  %s91_s23 = sshll.u32 %s162_s22, 4  ;;  %s92_s23 = int_to_ptr.vmem [resolvable:$true] %s91_s23 }
  0x10   :  { %35 = vadd.xlane.f32.xlu0 %v34_v2  ;;  %s135_s0 = scalar_lea.vmem %s92_s23, 256  ;;  %p140_p6 = scmp.lt.s32.totalorder %s92_s23, %s92_s23 }
  0x11   :  { %p136_p5 = scmp.ne.s32.totalorder %s92_s23, %s135_s0  ;;  %p141_p7 = scmp.lt.s32.totalorder %s135_s0, %s135_s0 }
  0x13   :  { %p142_p8 = por %p141_p7, %p140_p6 }
  0x14   :  { %38 = vadd.xlane.f32.xlu0 %v37_v3 }
  0x15   :  { %p143_p9 = pnand %p142_p8, %p136_p5 }
  0x99   :  { %v36_v4 = vpop.xlane.xlu0 %35 }
  0x9a   :  { %v41_v5 = vmul.f32 0.03125, %v36_v4 }
  0x9c   :  { %v43_v6 = vsub.f32 %v31_v0, %v41_v5 }
  0x9d   :  { %v39_v7 = vpop.xlane.xlu0 %38 }
  0x9e   :  { %v42_v8 = vmul.f32 0.03125, %v39_v7  ;;  %v45_v9 = vmul.f32 %v43_v6, %v43_v6 }
  0xa0   :  { %v44_v10 = vsub.f32 %v32_v1, %v42_v8  ;;  %v47_v11 = vsel %vm33_vm0, %v45_v9, 0.0 }
  0xa1   :  { %48 = vadd.xlane.f32.xlu1 %v47_v11 }
  0xa2   :  { %v46_v12 = vmul.f32 %v44_v10, %v44_v10 }
  0xa4   :  { %v50_v13 = vsel %vm33_vm0, %v46_v12, 0.0 }
  0xa5   :  { %51 = vadd.xlane.f32.xlu1 %v50_v13 }
 0x12a   :  { %v49_v14 = vpop.xlane.xlu1 %48 }
 0x12b   :  { %v54_v15 = vmul.f32 0.032258064, %v49_v14 }
 0x12d   :  { %107 = vrsqrt.f32 %v54_v15  ;;  %vm58_vm1 = vcmp.eq.f32.partialorder %v54_v15, inf  ;;  %v61_v20 = vand.u32 2147483648, %v54_v15  ;;  %vm60_vm2 = vcmp.eq.f32.partialorder %v54_v15, 0.0 }
 0x12e   :  { %v52_v16 = vpop.xlane.xlu1 %51 }
 0x12f   :  { %v55_v17 = vmul.f32 0.032258064, %v52_v16 }
 0x131   :  { %109 = vrsqrt.f32 %v55_v17  ;;  %vm65_vm3 = vcmp.eq.f32.partialorder %v55_v17, inf  ;;  %v68_v26 = vand.u32 2147483648, %v55_v17  ;;  %vm67_vm4 = vcmp.eq.f32.partialorder %v55_v17, 0.0 }
 0x13a   :  { %v108_v18 = vpop.eup %107 }
 0x13b   :  { %v57_v19 = vmul.f32 %v108_v18, %v54_v15 }
 0x13d   :  { %v59_v21 = vsel %vm58_vm1, %v54_v15, %v57_v19 }
 0x13e   :  { %v110_v22 = vpop.eup %109  ;;  %v62_v23 = vsel %vm60_vm2, %v61_v20, %v59_v21 }
 0x13f   :  { %v71_v24 = vadd.f32 1e-06, %v62_v23  ;;  %v64_v25 = vmul.f32 %v110_v22, %v55_v17 }
 0x141   :  { %111 = vrcp.f32 %v71_v24  ;;  %v66_v27 = vsel %vm65_vm3, %v55_v17, %v64_v25 }
 0x142   :  { %v69_v28 = vsel %vm67_vm4, %v68_v26, %v66_v27 }
 0x143   :  { %v72_v29 = vadd.f32 1e-06, %v69_v28 }
 0x145   :  { %113 = vrcp.f32 %v72_v29 }
 0x14e   :  { %v112_v31 = vpop.eup %111 }
 0x14f   :  { %v75_v32 = vmul.f32 %v112_v31, %v73_v30 }
 0x151   :  { %v78_v34 = vmul.f32 %v75_v32, %v43_v6 }
 0x152   :  { %v114_v35 = vpop.eup %113 }
 0x153   :  { %v77_v36 = vmul.f32 %v114_v35, %v73_v30  ;;  %v82_v37 = vadd.f32 %v81_v33, %v78_v34 }
 0x155   :  { %v79_v38 = vmul.f32 %v77_v36, %v44_v10  ;;  %84 = vst.msk [vmem:[#allocation7] sm:$0xff] %vm33_vm0, %v82_v37 }
 0x157   :  { %v83_v39 = vadd.f32 %v81_v33, %v79_v38 }
 0x159   :  { %85 = vst.msk [vmem:[#allocation7 + $0x8] sm:$0xff] %vm33_vm0, %v83_v39 }
 0x15a   :  { %146 = shalt.err (!%p143_p9)
}
 0x15b   :  { %97 = dma.vmem_to_hbm [thread:$0]  %s92_s23, 256, %s210_s3, [#allocation6], %s160_s15, %s160_s15, %s161_s16  }
 0x15c   :  { %157 = dma.done.wait [#allocation6], 256  }
 0x15d   :  { %158 = vsyncadd [#allocation6], 4294967040 }
 0x15e   :  { %101 = vsyncpa [#allocation5], 1 }
 0x15f   :  { %102 = vsyncpa [#allocation6], 1 }

</bundles_post_ra>
